<compile_context>
chip_gen: v7x
topology: tpu7x:2x2x1
jax: 0.10.0
libtpu: 0.0.40
codegen_flags: <defaults>
</compile_context>

<pallas_src>
import functools

import jax
import jax.numpy as jnp
import numpy as np
from jax.experimental import pallas as pl
from jax.experimental.pallas import tpu as pltpu


def _bilinear_upsample_matrix(n_in: int) -> np.ndarray:
    """Dense (2*n_in, n_in) 1-D bilinear 2x upsample operator, align_corners=False.

    Built on the host with numpy; the weights (0.25 / 0.75 / 1.0) are exact in bf16.
    """
    n_out = 2 * n_in
    o = np.arange(n_out, dtype=np.float64)
    src = (o + 0.5) / 2.0 - 0.5
    i0 = np.floor(src)
    frac = src - i0
    i0c = np.clip(i0, 0, n_in - 1).astype(np.int64)
    i1c = np.clip(i0 + 1, 0, n_in - 1).astype(np.int64)
    m = np.zeros((n_out, n_in), dtype=np.float64)
    np.add.at(m, (np.arange(n_out), i0c), 1.0 - frac)
    np.add.at(m, (np.arange(n_out), i1c), frac)
    return m.astype(np.float32)


def _blockdiag_uwt(w: int, c_out: int) -> np.ndarray:
    """Block-diagonal U_w^T of shape (C_out*W, C_out*2W): one W-pass matmul for
    all channels with a lane-dense N dimension."""
    uwt = _bilinear_upsample_matrix(w).T          # (W, 2W)
    blk = np.zeros((c_out * w, c_out * 2 * w), dtype=np.float32)
    for co in range(c_out):
        blk[co * w:(co + 1) * w, co * 2 * w:(co + 1) * 2 * w] = uwt
    return blk


def _upsample_conv_kernel(x_ref, uh_ref, uwb_ref, w_ref, o_ref):
    # x_ref  : (1, C_in, H, W)              bf16, VMEM
    # uh_ref : (T2H, H)                     bf16, VMEM  (row tile of U_h)
    # uwb_ref: (C_out*W, C_out*2W)          bf16, VMEM  (block-diag U_w^T)
    # w_ref  : (C_out, C_in)                f32,  SMEM  (1x1 conv weight)
    # o_ref  : (1, T2H, C_out*2W)           VMEM  (channel-packed, lane-dense)
    c_in = x_ref.shape[1]
    c_out = w_ref.shape[0]

    # 1x1 conv (channel mix) on the VPU, f32 accumulation; planes loaded once.
    xs = [x_ref[0, ci].astype(jnp.float32) for ci in range(c_in)]
    ys = []
    for co in range(c_out):
        y = w_ref[co, 0] * xs[0]
        for ci in range(1, c_in):
            y = y + w_ref[co, ci] * xs[ci]
        ys.append(y)
    # Pack channels along the lane axis: (H, C_out*W).
    y_wide = jnp.concatenate(ys, axis=-1).astype(jnp.bfloat16)

    # H-upsample first (row tile), all channels in one MXU call:
    #   (T2H, H) @ (H, C_out*W) -> (T2H, C_out*W)
    t = jnp.dot(uh_ref[...], y_wide, preferred_element_type=jnp.float32)
    # W-upsample, all channels in one MXU call via the block-diagonal operator:
    #   (T2H, C_out*W) @ (C_out*W, C_out*2W) -> (T2H, C_out*2W)
    out = jnp.dot(t.astype(jnp.bfloat16), uwb_ref[...],
                  preferred_element_type=jnp.float32)
    o_ref[0] = out.astype(o_ref.dtype)


def _pick_block_2h(h2: int, n: int) -> int:
    # Collapse the row-tile axis for small problems (amortize ~0.35us/step);
    # cap the tile for big H (re-derive / shrink further for v7x's 64 MiB VMEM).
    block_2h = h2 if h2 <= 512 else 512
    while h2 % block_2h != 0:
        block_2h //= 2
    # v7x has 2 TensorCores: keep >=2 parallel grid points when N == 1.
    if n == 1 and block_2h == h2 and h2 >= 32 and (h2 // 2) % 16 == 0:
        block_2h = h2 // 2
    return block_2h


def upsample_forward(x_nchw, conv_w, *, block_2h=None, out_dtype=jnp.float32):
    """Equivalent of UpSample.forward.

    x_nchw : (N, C_in, H, W) with C_in = in_channels + s_factor
    conv_w : (C_out, C_in, 1, 1) 1x1 conv weight (no bias)
    returns: (N, C_out, 2H, 2W) in `out_dtype`, NCHW
    """
    n, c_in, h, w = x_nchw.shape
    c_out = conv_w.shape[0]
    h2, w2 = 2 * h, 2 * w

    if block_2h is None:
        block_2h = _pick_block_2h(h2, n)
    assert h2 % block_2h == 0, (h2, block_2h)
    assert block_2h == h2 or block_2h % 16 == 0, block_2h
    n_j = h2 // block_2h

    # Host-built separable bilinear operators (tiny constants, exact in bf16).
    uh = jnp.asarray(_bilinear_upsample_matrix(h), dtype=jnp.bfloat16)       # (2H, H)
    uwb = jnp.asarray(_blockdiag_uwt(w, c_out), dtype=jnp.bfloat16)          # (C_out*W, C_out*2W)

    w_mat = conv_w[:, :, 0, 0].astype(jnp.float32)   # (C_out, C_in) -> SMEM scalars
    x_bf16 = x_nchw.astype(jnp.bfloat16)             # halve input DMA bytes

    lanes = c_out * w2
    out_packed = pl.pallas_call(
        _upsample_conv_kernel,
        out_shape=jax.ShapeDtypeStruct((n, h2, lanes), out_dtype),
        grid_spec=pltpu.PrefetchScalarGridSpec(
            num_scalar_prefetch=0,
            grid=(n, n_j),
            in_specs=[
                pl.BlockSpec((1, c_in, h, w), lambda b, j: (b, 0, 0, 0)),
                pl.BlockSpec((block_2h, h), lambda b, j: (j, 0)),
                pl.BlockSpec((c_out * w, lanes), lambda b, j: (0, 0)),
                pl.BlockSpec(memory_space=pltpu.MemorySpace.SMEM),
            ],
            out_specs=pl.BlockSpec((1, block_2h, lanes), lambda b, j: (b, j, 0)),
        ),
        compiler_params=pltpu.CompilerParams(
            dimension_semantics=("parallel", "parallel")),
    )(x_bf16, uh, uwb, w_mat)

    # Layout plumbing back to NCHW (outside the kernel).
    return jnp.transpose(out_packed.reshape(n, h2, c_out, w2), (0, 2, 1, 3))


if __name__ == "__main__":
    # Matches nn.Conv2d(in_channels + s_factor, in_channels, 1, bias=False)
    in_channels, s_factor = 4, 2
    c_in = in_channels + s_factor      # conv input channels = 6
    c_out = in_channels                # conv output channels = 4
    N, H, W = 2, 16, 16

    key = jax.random.PRNGKey(0)
    kx, kw = jax.random.split(key)
    x = jax.random.normal(kx, (N, c_in, H, W), dtype=jnp.float32)
    conv_w = jax.random.normal(kw, (c_out, c_in, 1, 1), dtype=jnp.float32) * (1.0 / np.sqrt(c_in))

    fwd = jax.jit(upsample_forward)
    out = jax.block_until_ready(fwd(x, conv_w))
    assert out.shape == (N, c_out, 2 * H, 2 * W), out.shape
    out_np = np.asarray(out)

    # Host-side references (numpy, f32).
    x_np = np.asarray(x, dtype=np.float32)
    w_np = np.asarray(conv_w[:, :, 0, 0], dtype=np.float32)
    uh_np = _bilinear_upsample_matrix(H)
    uw_np = _bilinear_upsample_matrix(W)

    # (a) Exact-f32 module semantics (upsample then 1x1 conv); loose tolerance
    #     because the kernel works at bf16 input/intermediate precision.
    up_ref = np.einsum("ph,qw,nchw->ncpq", uh_np, uw_np, x_np)
    ref_f32 = np.einsum("oc,ncpq->nopq", w_np, up_ref)
    err_a = float(np.max(np.abs(out_np - ref_f32)))
    assert np.allclose(out_np, ref_f32, rtol=3e-2, atol=3e-2), err_a

    # (b) Reference mirroring the kernel's bf16 rounding points and pass order
    #     (conv -> H-upsample -> W-upsample): tighter structural check.
    def _bf16(a):
        return np.asarray(jnp.asarray(a, dtype=jnp.bfloat16), dtype=np.float32)

    xb = _bf16(x_np)
    y = np.einsum("oc,nchw->nohw", w_np, xb)                       # conv first (f32 accum)
    t = np.einsum("ph,nohw->nopw", _bf16(uh_np), _bf16(y))         # H upsample
    ref_m = np.einsum("qw,nopw->nopq", _bf16(uw_np), _bf16(t))     # W upsample
    err_b = float(np.max(np.abs(out_np - ref_m)))
    assert np.allclose(out_np, ref_m, rtol=5e-3, atol=5e-3), err_b

    print("KERNEL_OK")
</pallas_src>

<mosaic_0001>
module attributes {stable_mosaic.version = 11 : i64} {
  func.func @_upsample_conv_kernel(%arg0: i32, %arg1: i32, %arg2: memref<1x6x16x16xbf16, #tpu.memory_space<vmem>>, %arg3: memref<32x16xbf16, #tpu.memory_space<vmem>>, %arg4: memref<64x128xbf16, #tpu.memory_space<vmem>>, %arg5: memref<4x6xf32, #tpu.memory_space<smem>>, %arg6: memref<1x32x128xf32, #tpu.memory_space<vmem>>) attributes {dimension_semantics = [#tpu.dimension_semantics<parallel>, #tpu.dimension_semantics<parallel>], iteration_bounds = array<i64: 2, 1>, scalar_prefetch = 0 : i64, scratch_operands = 0 : i64, tpu.core_type = #tpu.core_type<tc>, window_params = [{transform_indices = @transform_0, window_bounds = array<i64: 1, 6, 16, 16>}, {transform_indices = @transform_1, window_bounds = array<i64: 32, 16>}, {pipeline_mode = #tpu.pipeline_mode<synchronous>, transform_indices = @transform_2, window_bounds = array<i64: 64, 128>}, {transform_indices = @transform_3, window_bounds = array<i64: 4, 6>}, {transform_indices = @transform_4, window_bounds = array<i64: 1, 32, 128>}]} {
    %c0 = arith.constant 0 : index
    %c0_0 = arith.constant 0 : index
    %c0_1 = arith.constant 0 : index
    %c0_2 = arith.constant 0 : index
    %0 = vector.load %arg2[%c0, %c0_0, %c0_1, %c0_2] : memref<1x6x16x16xbf16, #tpu.memory_space<vmem>>, vector<1x1x16x16xbf16>
    %1 = vector.shape_cast %0 : vector<1x1x16x16xbf16> to vector<16x16xbf16>
    %2 = arith.extf %1 : vector<16x16xbf16> to vector<16x16xf32>
    %c0_3 = arith.constant 0 : index
    %c1 = arith.constant 1 : index
    %c0_4 = arith.constant 0 : index
    %c0_5 = arith.constant 0 : index
    %3 = vector.load %arg2[%c0_3, %c1, %c0_4, %c0_5] : memref<1x6x16x16xbf16, #tpu.memory_space<vmem>>, vector<1x1x16x16xbf16>
    %4 = vector.shape_cast %3 : vector<1x1x16x16xbf16> to vector<16x16xbf16>
    %5 = arith.extf %4 : vector<16x16xbf16> to vector<16x16xf32>
    %c0_6 = arith.constant 0 : index
    %c2 = arith.constant 2 : index
    %c0_7 = arith.constant 0 : index
    %c0_8 = arith.constant 0 : index
    %6 = vector.load %arg2[%c0_6, %c2, %c0_7, %c0_8] : memref<1x6x16x16xbf16, #tpu.memory_space<vmem>>, vector<1x1x16x16xbf16>
    %7 = vector.shape_cast %6 : vector<1x1x16x16xbf16> to vector<16x16xbf16>
    %8 = arith.extf %7 : vector<16x16xbf16> to vector<16x16xf32>
    %c0_9 = arith.constant 0 : index
    %c3 = arith.constant 3 : index
    %c0_10 = arith.constant 0 : index
    %c0_11 = arith.constant 0 : index
    %9 = vector.load %arg2[%c0_9, %c3, %c0_10, %c0_11] : memref<1x6x16x16xbf16, #tpu.memory_space<vmem>>, vector<1x1x16x16xbf16>
    %10 = vector.shape_cast %9 : vector<1x1x16x16xbf16> to vector<16x16xbf16>
    %11 = arith.extf %10 : vector<16x16xbf16> to vector<16x16xf32>
    %c0_12 = arith.constant 0 : index
    %c4 = arith.constant 4 : index
    %c0_13 = arith.constant 0 : index
    %c0_14 = arith.constant 0 : index
    %12 = vector.load %arg2[%c0_12, %c4, %c0_13, %c0_14] : memref<1x6x16x16xbf16, #tpu.memory_space<vmem>>, vector<1x1x16x16xbf16>
    %13 = vector.shape_cast %12 : vector<1x1x16x16xbf16> to vector<16x16xbf16>
    %14 = arith.extf %13 : vector<16x16xbf16> to vector<16x16xf32>
    %c0_15 = arith.constant 0 : index
    %c5 = arith.constant 5 : index
    %c0_16 = arith.constant 0 : index
    %c0_17 = arith.constant 0 : index
    %15 = vector.load %arg2[%c0_15, %c5, %c0_16, %c0_17] : memref<1x6x16x16xbf16, #tpu.memory_space<vmem>>, vector<1x1x16x16xbf16>
    %16 = vector.shape_cast %15 : vector<1x1x16x16xbf16> to vector<16x16xbf16>
    %17 = arith.extf %16 : vector<16x16xbf16> to vector<16x16xf32>
    %c0_18 = arith.constant 0 : index
    %c0_19 = arith.constant 0 : index
    %18 = memref.load %arg5[%c0_18, %c0_19] : memref<4x6xf32, #tpu.memory_space<smem>>
    %19 = vector.broadcast %18 : f32 to vector<16x16xf32>
    %20 = arith.mulf %19, %2 : vector<16x16xf32>
    %c0_20 = arith.constant 0 : index
    %c1_21 = arith.constant 1 : index
    %21 = memref.load %arg5[%c0_20, %c1_21] : memref<4x6xf32, #tpu.memory_space<smem>>
    %22 = vector.broadcast %21 : f32 to vector<16x16xf32>
    %23 = arith.mulf %22, %5 : vector<16x16xf32>
    %24 = arith.addf %20, %23 : vector<16x16xf32>
    %c0_22 = arith.constant 0 : index
    %c2_23 = arith.constant 2 : index
    %25 = memref.load %arg5[%c0_22, %c2_23] : memref<4x6xf32, #tpu.memory_space<smem>>
    %26 = vector.broadcast %25 : f32 to vector<16x16xf32>
    %27 = arith.mulf %26, %8 : vector<16x16xf32>
    %28 = arith.addf %24, %27 : vector<16x16xf32>
    %c0_24 = arith.constant 0 : index
    %c3_25 = arith.constant 3 : index
    %29 = memref.load %arg5[%c0_24, %c3_25] : memref<4x6xf32, #tpu.memory_space<smem>>
    %30 = vector.broadcast %29 : f32 to vector<16x16xf32>
    %31 = arith.mulf %30, %11 : vector<16x16xf32>
    %32 = arith.addf %28, %31 : vector<16x16xf32>
    %c0_26 = arith.constant 0 : index
    %c4_27 = arith.constant 4 : index
    %33 = memref.load %arg5[%c0_26, %c4_27] : memref<4x6xf32, #tpu.memory_space<smem>>
    %34 = vector.broadcast %33 : f32 to vector<16x16xf32>
    %35 = arith.mulf %34, %14 : vector<16x16xf32>
    %36 = arith.addf %32, %35 : vector<16x16xf32>
    %c0_28 = arith.constant 0 : index
    %c5_29 = arith.constant 5 : index
    %37 = memref.load %arg5[%c0_28, %c5_29] : memref<4x6xf32, #tpu.memory_space<smem>>
    %38 = vector.broadcast %37 : f32 to vector<16x16xf32>
    %39 = arith.mulf %38, %17 : vector<16x16xf32>
    %40 = arith.addf %36, %39 : vector<16x16xf32>
    %c1_30 = arith.constant 1 : index
    %c0_31 = arith.constant 0 : index
    %41 = memref.load %arg5[%c1_30, %c0_31] : memref<4x6xf32, #tpu.memory_space<smem>>
    %42 = vector.broadcast %41 : f32 to vector<16x16xf32>
    %43 = arith.mulf %42, %2 : vector<16x16xf32>
    %c1_32 = arith.constant 1 : index
    %c1_33 = arith.constant 1 : index
    %44 = memref.load %arg5[%c1_32, %c1_33] : memref<4x6xf32, #tpu.memory_space<smem>>
    %45 = vector.broadcast %44 : f32 to vector<16x16xf32>
    %46 = arith.mulf %45, %5 : vector<16x16xf32>
    %47 = arith.addf %43, %46 : vector<16x16xf32>
    %c1_34 = arith.constant 1 : index
    %c2_35 = arith.constant 2 : index
    %48 = memref.load %arg5[%c1_34, %c2_35] : memref<4x6xf32, #tpu.memory_space<smem>>
    %49 = vector.broadcast %48 : f32 to vector<16x16xf32>
    %50 = arith.mulf %49, %8 : vector<16x16xf32>
    %51 = arith.addf %47, %50 : vector<16x16xf32>
    %c1_36 = arith.constant 1 : index
    %c3_37 = arith.constant 3 : index
    %52 = memref.load %arg5[%c1_36, %c3_37] : memref<4x6xf32, #tpu.memory_space<smem>>
    %53 = vector.broadcast %52 : f32 to vector<16x16xf32>
    %54 = arith.mulf %53, %11 : vector<16x16xf32>
    %55 = arith.addf %51, %54 : vector<16x16xf32>
    %c1_38 = arith.constant 1 : index
    %c4_39 = arith.constant 4 : index
    %56 = memref.load %arg5[%c1_38, %c4_39] : memref<4x6xf32, #tpu.memory_space<smem>>
    %57 = vector.broadcast %56 : f32 to vector<16x16xf32>
    %58 = arith.mulf %57, %14 : vector<16x16xf32>
    %59 = arith.addf %55, %58 : vector<16x16xf32>
    %c1_40 = arith.constant 1 : index
    %c5_41 = arith.constant 5 : index
    %60 = memref.load %arg5[%c1_40, %c5_41] : memref<4x6xf32, #tpu.memory_space<smem>>
    %61 = vector.broadcast %60 : f32 to vector<16x16xf32>
    %62 = arith.mulf %61, %17 : vector<16x16xf32>
    %63 = arith.addf %59, %62 : vector<16x16xf32>
    %c2_42 = arith.constant 2 : index
    %c0_43 = arith.constant 0 : index
    %64 = memref.load %arg5[%c2_42, %c0_43] : memref<4x6xf32, #tpu.memory_space<smem>>
    %65 = vector.broadcast %64 : f32 to vector<16x16xf32>
    %66 = arith.mulf %65, %2 : vector<16x16xf32>
    %c2_44 = arith.constant 2 : index
    %c1_45 = arith.constant 1 : index
    %67 = memref.load %arg5[%c2_44, %c1_45] : memref<4x6xf32, #tpu.memory_space<smem>>
    %68 = vector.broadcast %67 : f32 to vector<16x16xf32>
    %69 = arith.mulf %68, %5 : vector<16x16xf32>
    %70 = arith.addf %66, %69 : vector<16x16xf32>
    %c2_46 = arith.constant 2 : index
    %c2_47 = arith.constant 2 : index
    %71 = memref.load %arg5[%c2_46, %c2_47] : memref<4x6xf32, #tpu.memory_space<smem>>
    %72 = vector.broadcast %71 : f32 to vector<16x16xf32>
    %73 = arith.mulf %72, %8 : vector<16x16xf32>
    %74 = arith.addf %70, %73 : vector<16x16xf32>
    %c2_48 = arith.constant 2 : index
    %c3_49 = arith.constant 3 : index
    %75 = memref.load %arg5[%c2_48, %c3_49] : memref<4x6xf32, #tpu.memory_space<smem>>
    %76 = vector.broadcast %75 : f32 to vector<16x16xf32>
    %77 = arith.mulf %76, %11 : vector<16x16xf32>
    %78 = arith.addf %74, %77 : vector<16x16xf32>
    %c2_50 = arith.constant 2 : index
    %c4_51 = arith.constant 4 : index
    %79 = memref.load %arg5[%c2_50, %c4_51] : memref<4x6xf32, #tpu.memory_space<smem>>
    %80 = vector.broadcast %79 : f32 to vector<16x16xf32>
    %81 = arith.mulf %80, %14 : vector<16x16xf32>
    %82 = arith.addf %78, %81 : vector<16x16xf32>
    %c2_52 = arith.constant 2 : index
    %c5_53 = arith.constant 5 : index
    %83 = memref.load %arg5[%c2_52, %c5_53] : memref<4x6xf32, #tpu.memory_space<smem>>
    %84 = vector.broadcast %83 : f32 to vector<16x16xf32>
    %85 = arith.mulf %84, %17 : vector<16x16xf32>
    %86 = arith.addf %82, %85 : vector<16x16xf32>
    %c3_54 = arith.constant 3 : index
    %c0_55 = arith.constant 0 : index
    %87 = memref.load %arg5[%c3_54, %c0_55] : memref<4x6xf32, #tpu.memory_space<smem>>
    %88 = vector.broadcast %87 : f32 to vector<16x16xf32>
    %89 = arith.mulf %88, %2 : vector<16x16xf32>
    %c3_56 = arith.constant 3 : index
    %c1_57 = arith.constant 1 : index
    %90 = memref.load %arg5[%c3_56, %c1_57] : memref<4x6xf32, #tpu.memory_space<smem>>
    %91 = vector.broadcast %90 : f32 to vector<16x16xf32>
    %92 = arith.mulf %91, %5 : vector<16x16xf32>
    %93 = arith.addf %89, %92 : vector<16x16xf32>
    %c3_58 = arith.constant 3 : index
    %c2_59 = arith.constant 2 : index
    %94 = memref.load %arg5[%c3_58, %c2_59] : memref<4x6xf32, #tpu.memory_space<smem>>
    %95 = vector.broadcast %94 : f32 to vector<16x16xf32>
    %96 = arith.mulf %95, %8 : vector<16x16xf32>
    %97 = arith.addf %93, %96 : vector<16x16xf32>
    %c3_60 = arith.constant 3 : index
    %c3_61 = arith.constant 3 : index
    %98 = memref.load %arg5[%c3_60, %c3_61] : memref<4x6xf32, #tpu.memory_space<smem>>
    %99 = vector.broadcast %98 : f32 to vector<16x16xf32>
    %100 = arith.mulf %99, %11 : vector<16x16xf32>
    %101 = arith.addf %97, %100 : vector<16x16xf32>
    %c3_62 = arith.constant 3 : index
    %c4_63 = arith.constant 4 : index
    %102 = memref.load %arg5[%c3_62, %c4_63] : memref<4x6xf32, #tpu.memory_space<smem>>
    %103 = vector.broadcast %102 : f32 to vector<16x16xf32>
    %104 = arith.mulf %103, %14 : vector<16x16xf32>
    %105 = arith.addf %101, %104 : vector<16x16xf32>
    %c3_64 = arith.constant 3 : index
    %c5_65 = arith.constant 5 : index
    %106 = memref.load %arg5[%c3_64, %c5_65] : memref<4x6xf32, #tpu.memory_space<smem>>
    %107 = vector.broadcast %106 : f32 to vector<16x16xf32>
    %108 = arith.mulf %107, %17 : vector<16x16xf32>
    %109 = arith.addf %105, %108 : vector<16x16xf32>
    %110 = tpu.concatenate %40, %63, %86, %109 in 1 : vector<16x16xf32>, vector<16x16xf32>, vector<16x16xf32>, vector<16x16xf32> -> vector<16x64xf32>
    %111 = arith.truncf %110 : vector<16x64xf32> to vector<16x64xbf16>
    %c0_66 = arith.constant 0 : index
    %c0_67 = arith.constant 0 : index
    %112 = vector.load %arg3[%c0_66, %c0_67] : memref<32x16xbf16, #tpu.memory_space<vmem>>, vector<32x16xbf16>
    %cst = arith.constant dense<0.000000e+00> : vector<32x64xf32>
    %113 = tpu.matmul %112, %111, %cst {dimension_numbers = #tpu.dot_dimension_numbers<[1], [0], [0], [1], [0, 0, 1, 1], [], []>} : vector<32x16xbf16>, vector<16x64xbf16>, vector<32x64xf32> -> vector<32x64xf32>
    %114 = arith.truncf %113 : vector<32x64xf32> to vector<32x64xbf16>
    %c0_68 = arith.constant 0 : index
    %c0_69 = arith.constant 0 : index
    %115 = vector.load %arg4[%c0_68, %c0_69] : memref<64x128xbf16, #tpu.memory_space<vmem>>, vector<64x128xbf16>
    %cst_70 = arith.constant dense<0.000000e+00> : vector<32x128xf32>
    %116 = tpu.matmul %114, %115, %cst_70 {dimension_numbers = #tpu.dot_dimension_numbers<[1], [0], [0], [1], [0, 0, 1, 1], [], []>} : vector<32x64xbf16>, vector<64x128xbf16>, vector<32x128xf32> -> vector<32x128xf32>
    %c0_71 = arith.constant 0 : index
    %c0_72 = arith.constant 0 : index
    %c0_73 = arith.constant 0 : index
    %117 = vector.load %arg6[%c0_71, %c0_72, %c0_73] : memref<1x32x128xf32, #tpu.memory_space<vmem>>, vector<1x32x128xf32>
    %118 = vector.shape_cast %117 : vector<1x32x128xf32> to vector<32x128xf32>
    %119 = vector.shape_cast %116 : vector<32x128xf32> to vector<1x32x128xf32>
    tpu.vector_store %arg6[%c0_71, %c0_72, %c0_73], %119 {strides = array<i32>} : memref<1x32x128xf32, #tpu.memory_space<vmem>>, vector<1x32x128xf32>,
    return
  }
  func.func @transform_0(%arg0: i32, %arg1: i32) -> (i32, i32, i32, i32) {
    %c0_i32 = arith.constant 0 : i32
    %c0_i32_0 = arith.constant 0 : i32
    %c0_i32_1 = arith.constant 0 : i32
    %c0_i32_2 = arith.constant 0 : i32
    return %arg0, %c0_i32, %c0_i32_0, %c0_i32_1 : i32, i32, i32, i32
  }
  func.func @transform_1(%arg0: i32, %arg1: i32) -> (i32, i32) {
    %c0_i32 = arith.constant 0 : i32
    %c0_i32_0 = arith.constant 0 : i32
    return %arg1, %c0_i32 : i32, i32
  }
  func.func @transform_2(%arg0: i32, %arg1: i32) -> (i32, i32) {
    %c0_i32 = arith.constant 0 : i32
    %c0_i32_0 = arith.constant 0 : i32
    %c0_i32_1 = arith.constant 0 : i32
    return %c0_i32, %c0_i32_0 : i32, i32
  }
  func.func @transform_3(%arg0: i32, %arg1: i32) -> (i32, i32) {
    %c0_i32 = arith.constant 0 : i32
    %c0_i32_0 = arith.constant 0 : i32
    %c0_i32_1 = arith.constant 0 : i32
    return %c0_i32, %c0_i32_0 : i32, i32
  }
  func.func @transform_4(%arg0: i32, %arg1: i32) -> (i32, i32, i32) {
    %c0_i32 = arith.constant 0 : i32
    %c0_i32_0 = arith.constant 0 : i32
    return %arg0, %arg1, %c0_i32 : i32, i32, i32
  }
}

</mosaic_0001>

<bundles_post_ra>
// kernel: upsample_forward.1
= control target key start
LH: loop header
LB: loop body
LE: loop exit
PB: predicated region body
PF: predicated region fallthrough
CT: control target
= control target key end

     0   :  { %9 = vsyncpa [#allocation3], 0  ;;  %s973_s15 = smov 0   ;;  %s975_s16 = smov 0   ;;  %s1202_s0 = inlined_call_operand.vmem [shape: bf16[2,6,16,16], index: 0, kind: input, shape index: {}]   ;;  %s1203_s1 = inlined_call_operand.vmem [shape: bf16[32,16], index: 1, kind: input, shape index: {}]   ;;  %s1204_s2 = inlined_call_operand.vmem [shape: bf16[64,128], index: 2, kind: input, shape index: {}]   ;;  %s1205_s3 = inlined_call_operand.vmem [shape: f32[4,6], index: 3, kind: input, shape index: {}]   ;;  %s1206_s4 = inlined_call_operand.vmem [shape: f32[2,32,128], index: 4, kind: output, shape index: {}]  }
   0x1   :  { %s977_s17 = smov 0  }
   0x2 LB: > { %s728_s18 = sadd.s32 4294967295, %s942_s17   ;;  %s27_s19 = sadd.s32 1, %s938_s16  ;;  %s942_s17 = sphi %s977_s17, %s15_s17   ;;  %s938_s16 = sphi %s975_s16, %s1210_s16   ;;  %s934_s15 = sphi %s973_s15, %s1209_s15  }
   0x3   : > { %p29_p0 = scmp.ge.s32.totalorder %s27_s19, 2  ;;  %p730_p1 = scmp.ge.s32.totalorder %s942_s17, 1 }
   0x4   : > { %p154_p2 = scmp.lt.s32.totalorder %s942_s17, 3  ;;  %p998_p4 = scmp.eq.s32.totalorder %s728_s18, 0 }
   0x5   : > { %s1212_s19 = smov (%p29_p0, %s27_s19), 0  ;;  %s179_s24 = sshll.u32 %s1205_s3, 4  ;;  %s180_s24 = int_to_ptr.vmem [resolvable:$true] %s179_s24 }
   0x6   : > { %p994_p3 = pnand %p730_p1, %p154_p2  ;;  %s901_s25 = scalar_lea.vmem %s180_s24, 64 }
   0x7   : > { %p902_p7 = scmp.ne.s32.totalorder %s180_s24, %s901_s25  ;;  %p909_p11 = scmp.lt.s32.totalorder %s180_s24, %s180_s24 }
   0x8   : > { %p846_p5 = pneg %p994_p3  ;;  %p910_p12 = scmp.lt.s32.totalorder %s901_s25, %s901_s25 }
   0xa   : > { %p847_p6 = pnand %p998_p4, %p846_p5  ;;  %p911_p13 = por %p910_p12, %p909_p11 }
   0xc   : > { %p903_p8 = pneg %p847_p6 }
   0xe   : > { %p904_p9 = pnand %p903_p8, %p902_p7 }
  0x10   : > { %p905_p10 = pneg %p904_p9 }
  0x12   : > { %p912_p0 = pnand %p911_p13, %p905_p10 }
  0x14   : > { %915 = shalt.err (!%p912_p0)
}
  0x15   : > { %s944_s26 = smov [#allocation2]   ;;  %200 = sbr.rel (%p994_p3) target bundleno = 627 (0x273), region = 36 }
  0x16   : > { %849 = dma.vmem_to_smem (!%p847_p6), %s180_s24, 64, %s944_s26, [#allocation3]  }
  0x1c   : > { %929 = dma.done.wait (%p998_p4), [#allocation3], 64  }
  0x1d   : > { %931 = vsyncadd (%p998_p4), [#allocation3], 4294967232 }
  0x1e   : > { %206 = sfence }
  0x1f   : > { %p236_p1 = scmp.lt.s32.totalorder %s934_s15, 1  ;;  %s1016_s27 = sld [smem:[#allocation2 + $0x80]]  ;;  %vm447_vm0 = vcmask 130048   ;;  %vm450_vm1 = vcmask 261120   ;;  %vm453_vm2 = vcmask 392192   ;;  %vm560_vm3 = vcmask 523264  }
  0x20   : > { %s1018_s28 = sld [smem:[#allocation2 + $0x81]]  ;;  %s1020_s29 = sld [smem:[#allocation2 + $0x82]] }
  0x21   : > { %s1214_s15 = smov (!%p236_p1, %s934_s15), 1  ;;  %s1025_s30 = sld [smem:[#allocation2 + $0x83]] }
  0x22   : > { %s1027_s5 = sld [smem:[#allocation2 + $0x84]]  ;;  %s841_s6 = smul.u32 48, %s1214_s15 }
  0x23   : > { %s1030_s7 = sld [smem:[#allocation2 + $0x85]]  ;;  %s1032_s8 = sld [smem:[#allocation2 + $0x100]] }
  0x24   : > { %s240_s11 = scalar_lea.vmem %s1202_s0, %s841_s6  ;;  %s1038_s12 = sld [smem:[#allocation2 + $0x101]] }
  0x25   : > { %v322_v0 = vstv %s1016_s27  ;;  %v786_v1 = vld [vmem:[%s240_s11] sm:$0xff]   ;;  %v809_v2 = vld [vmem:[%s240_s11 + $0x8] sm:$0xff]   ;;  %v810_v3 = vld [vmem:[%s240_s11 + $0x10] sm:$0xff]   ;;  %s1041_s13 = sld [smem:[#allocation2 + $0x102]]  ;;  %s1051_s14 = sld [smem:[#allocation2 + $0x103]] }
  0x26   : > { %v326_v4 = vstv %s1018_s28  ;;  %v1043_v5 = vunpack.c.l.bf16 %v786_v1  ;;  %v1045_v6 = vunpack.c.h.bf16 %v786_v1  ;;  %v1047_v7 = vunpack.c.l.bf16 %v809_v2  ;;  %v811_v9 = vld [vmem:[%s240_s11 + $0x18] sm:$0xff]   ;;  %v812_v10 = vld [vmem:[%s240_s11 + $0x20] sm:$0xff]   ;;  %v813_v11 = vld [vmem:[%s240_s11 + $0x28] sm:$0xff]   ;;  %s1077_s18 = sld [smem:[#allocation2 + $0x104]]  ;;  %s1079_s20 = sld [smem:[#allocation2 + $0x105]] }
  0x27   : > { %v1049_v8 = vunpack.c.h.bf16 %v809_v2  ;;  %v1053_v12 = vunpack.c.l.bf16 %v810_v3  ;;  %v1055_v13 = vunpack.c.h.bf16 %v810_v3  ;;  %v1057_v14 = vunpack.c.l.bf16 %v811_v9  ;;  %s1087_s21 = sld [smem:[#allocation2 + $0x180]]  ;;  %s1091_s22 = sld [smem:[#allocation2 + $0x181]] }
  0x28   : > { %v1059_v15 = vunpack.c.h.bf16 %v811_v9  ;;  %v1061_v16 = vunpack.c.l.bf16 %v812_v10  ;;  %v1063_v17 = vunpack.c.h.bf16 %v812_v10  ;;  %v1065_v18 = vunpack.c.l.bf16 %v813_v11  ;;  %s1093_s23 = sld [smem:[#allocation2 + $0x182]]  ;;  %s1105_s24 = sld [smem:[#allocation2 + $0x183]] }
  0x29   : > { %v1067_v19 = vunpack.c.h.bf16 %v813_v11  ;;  %v323_v20 = vmul.f32 %v1043_v5, %v322_v0  ;;  %v324_v21 = vmul.f32 %v1045_v6, %v322_v0  ;;  %v327_v22 = vmul.f32 %v1047_v7, %v326_v4  ;;  %s1107_s25 = sld [smem:[#allocation2 + $0x184]]  ;;  %s1115_s26 = sld [smem:[#allocation2 + $0x185]] }
  0x2a   : > { %v328_v23 = vmul.f32 %v1049_v8, %v326_v4  ;;  %v332_v24 = vstv %s1020_s29  ;;  %v338_v25 = vstv %s1025_s30  ;;  %v344_v26 = vstv %s1027_s5  ;;  %s1117_s27 = sld [smem:[#allocation2]]  ;;  %s1124_s28 = sld [smem:[#allocation2 + $0x1]] }
  0x2b   : > { %v350_v27 = vstv %s1030_s7  ;;  %v329_v28 = vadd.f32 %v327_v22, %v323_v20  ;;  %v333_v30 = vmul.f32 %v1053_v12, %v332_v24  ;;  %v334_v31 = vmul.f32 %v1055_v13, %v332_v24  ;;  %s1126_s29 = sld [smem:[#allocation2 + $0x2]]  ;;  %s945_s30 = smov 16  }
  0x2c   : > { %v330_v29 = vadd.f32 %v328_v23, %v324_v21  ;;  %v339_v32 = vmul.f32 %v1057_v14, %v338_v25  ;;  %v340_v33 = vmul.f32 %v1059_v15, %v338_v25  ;;  %v345_v34 = vmul.f32 %v1061_v16, %v344_v26  ;;  %s1134_s5 = sld [smem:[#allocation2 + $0x3]]  ;;  %s1136_s6 = sld [smem:[#allocation2 + $0x4]] }
  0x2d   : > { %v346_v35 = vmul.f32 %v1063_v17, %v344_v26  ;;  %v335_v36 = vadd.f32 %v333_v30, %v329_v28  ;;  %v351_v38 = vmul.f32 %v1065_v18, %v350_v27  ;;  %v352_v39 = vmul.f32 %v1067_v19, %v350_v27  ;;  %s1142_s7 = sld [smem:[#allocation2 + $0x5]] }
  0x2e   : > { %v336_v37 = vadd.f32 %v334_v31, %v330_v29  ;;  %v356_v40 = vstv %s1032_s8  ;;  %v360_v41 = vstv %s1038_s12  ;;  %v366_v42 = vstv %s1041_s13  ;;  %s946_s8 = smov 32  }
  0x2f   : > { %v372_v43 = vstv %s1051_s14  ;;  %v341_v44 = vadd.f32 %v339_v32, %v335_v36  ;;  %v357_v46 = vmul.f32 %v1043_v5, %v356_v40  ;;  %v358_v47 = vmul.f32 %v1045_v6, %v356_v40 }
  0x30   : > { %v342_v45 = vadd.f32 %v340_v33, %v336_v37  ;;  %v361_v48 = vmul.f32 %v1047_v7, %v360_v41  ;;  %v362_v49 = vmul.f32 %v1049_v8, %v360_v41  ;;  %v367_v50 = vmul.f32 %v1053_v12, %v366_v42 }
  0x31   : > { %v368_v51 = vmul.f32 %v1055_v13, %v366_v42  ;;  %v347_v52 = vadd.f32 %v345_v34, %v341_v44  ;;  %v373_v54 = vmul.f32 %v1057_v14, %v372_v43  ;;  %v374_v55 = vmul.f32 %v1059_v15, %v372_v43 }
  0x32   : > { %v348_v53 = vadd.f32 %v346_v35, %v342_v45  ;;  %v363_v56 = vadd.f32 %v361_v48, %v357_v46  ;;  %v364_v57 = vadd.f32 %v362_v49, %v358_v47  ;;  %v378_v58 = vstv %s1077_s18  ;;  %s947_s18 = smov 48  }
  0x33   : > { %v384_v59 = vstv %s1079_s20  ;;  %v353_v60 = vadd.f32 %v351_v38, %v347_v52  ;;  %v379_v62 = vmul.f32 %v1061_v16, %v378_v58  ;;  %v380_v63 = vmul.f32 %v1063_v17, %v378_v58 }
  0x34   : > { %v354_v61 = vadd.f32 %v352_v39, %v348_v53  ;;  %v369_v0 = vadd.f32 %v367_v50, %v363_v56  ;;  %v370_v1 = vadd.f32 %v368_v51, %v364_v57  ;;  %v385_v2 = vmul.f32 %v1065_v18, %v384_v59 }
  0x35   : > { %v386_v3 = vmul.f32 %v1067_v19, %v384_v59  ;;  %v390_v9 = vstv %s1087_s21  ;;  %v394_v10 = vstv %s1091_s22  ;;  %v400_v11 = vstv %s1093_s23 }
  0x36   : > { %v880_v4 = vpack.i.bf16 %v354_v61, %v353_v60  ;;  %v375_v20 = vadd.f32 %v373_v54, %v369_v0  ;;  %v376_v21 = vadd.f32 %v374_v55, %v370_v1  ;;  %v391_v22 = vmul.f32 %v1043_v5, %v390_v9  ;;  %v895_v54 = vld [vmem:[%s1203_s1] sm:$0xff]  }
  0x37   : > { %v392_v23 = vmul.f32 %v1045_v6, %v390_v9  ;;  %v395_v24 = vmul.f32 %v1047_v7, %v394_v10  ;;  %v396_v25 = vmul.f32 %v1049_v8, %v394_v10  ;;  %v401_v26 = vmul.f32 %v1053_v12, %v400_v11  ;;  %825 = vmatprep.mubr.msk.bf16.mxu0 %vm447_vm0, %v895_v54 }
  0x38   : > { %881 = vrot.lane.b32.xlu0 %v880_v4, %s945_s30  ;;  %v402_v27 = vmul.f32 %v1055_v13, %v400_v11  ;;  %v381_v28 = vadd.f32 %v379_v62, %v375_v20  ;;  %v382_v29 = vadd.f32 %v380_v63, %v376_v21  ;;  %v406_v30 = vstv %s1105_s24  ;;  %v898_v63 = vld [vmem:[%s1204_s2 + $0x8] sm:$0xff]  }
  0x39   : > { %v412_v31 = vstv %s1107_s25  ;;  %v397_v32 = vadd.f32 %v395_v24, %v391_v22  ;;  %v398_v33 = vadd.f32 %v396_v25, %v392_v23  ;;  %v407_v34 = vmul.f32 %v1057_v14, %v406_v30 }
  0x3a   : > { %v408_v35 = vmul.f32 %v1059_v15, %v406_v30  ;;  %v387_v36 = vadd.f32 %v385_v2, %v381_v28  ;;  %v388_v37 = vadd.f32 %v386_v3, %v382_v29  ;;  %v413_v38 = vmul.f32 %v1061_v16, %v412_v31 }
  0x3b   : > { %v414_v39 = vmul.f32 %v1063_v17, %v412_v31  ;;  %v403_v40 = vadd.f32 %v401_v26, %v397_v32  ;;  %v404_v41 = vadd.f32 %v402_v27, %v398_v33  ;;  %v418_v42 = vstv %s1115_s26  ;;  %s784_s26 = sshll.u32 %s1214_s15, 5 }
  0x3c   : > { %v288_v43 = vstv %s1117_s27  ;;  %v885_v44 = vpack.i.bf16 %v388_v37, %v387_v36  ;;  %v419_v45 = vmul.f32 %v1065_v18, %v418_v42  ;;  %v420_v46 = vmul.f32 %v1067_v19, %v418_v42  ;;  %v896_v37 = vld [vmem:[%s1203_s1 + $0x8] sm:$0xff]  }
  0x3d   : > { %v290_v47 = vmul.f32 %v1045_v6, %v288_v43  ;;  %v409_v48 = vadd.f32 %v407_v34, %v403_v40  ;;  %v410_v49 = vadd.f32 %v408_v35, %v404_v41  ;;  %v292_v50 = vstv %s1124_s28 }
  0x3e   : > { %v298_v51 = vstv %s1126_s29  ;;  %886 = vrot.lane.b32.xlu0 %v885_v44, %s946_s8  ;;  %v294_v52 = vmul.f32 %v1049_v8, %v292_v50  ;;  %v304_v57 = vstv %s1134_s5  ;;  %v310_v6 = vstv %s1136_s6  ;;  %s255_s29 = scalar_lea.vmem %s1206_s4, %s784_s26 }
  0x3f   : > { %v300_v53 = vmul.f32 %v1055_v13, %v298_v51  ;;  %v415_v55 = vadd.f32 %v413_v38, %v409_v48  ;;  %v416_v56 = vadd.f32 %v414_v39, %v410_v49  ;;  %v293_v58 = vmul.f32 %v1047_v7, %v292_v50  ;;  %v897_v13 = vld [vmem:[%s1204_s2] sm:$0xff]   ;;  %v900_v38 = vld [vmem:[%s1204_s2 + $0x18] sm:$0xff]  }
  0x40   : > { %v296_v59 = vadd.f32 %v294_v52, %v290_v47  ;;  %v306_v60 = vmul.f32 %v1059_v15, %v304_v57  ;;  %v316_v62 = vstv %s1142_s7  ;;  %v299_v0 = vmul.f32 %v1053_v12, %v298_v51  ;;  %829 = vmatprep.subr.bf16.mxu1 %v897_v13  ;;  %v899_v12 = vld [vmem:[%s1204_s2 + $0x10] sm:$0xff]  }
  0x41   : > { %v421_v61 = vadd.f32 %v419_v45, %v415_v55  ;;  %v422_v8 = vadd.f32 %v420_v46, %v416_v56  ;;  %v312_v7 = vmul.f32 %v1063_v17, %v310_v6  ;;  %v289_v15 = vmul.f32 %v1043_v5, %v288_v43  ;;  %830 = vmatpush3.bf16.msra.mxu1 %v897_v13 }
  0x42   : > { %v302_v1 = vadd.f32 %v300_v53, %v296_v59  ;;  %v305_v3 = vmul.f32 %v1057_v14, %v304_v57  ;;  %v318_v9 = vmul.f32 %v1067_v19, %v316_v62  ;;  %831 = vmatprep.subr.bf16.mxu1 %v898_v63  ;;  %v311_v17 = vmul.f32 %v1061_v16, %v310_v6 }
  0x43   : > { %v890_v2 = vpack.i.bf16 %v422_v8, %v421_v61  ;;  %v295_v10 = vadd.f32 %v293_v58, %v289_v15  ;;  %v317_v20 = vmul.f32 %v1065_v18, %v316_v62 }
  0x44   : > { %v308_v4 = vadd.f32 %v306_v60, %v302_v1 }
  0x45   : > { %891 = vrot.lane.b32.xlu1 %v890_v2, %s947_s18  ;;  %v301_v5 = vadd.f32 %v299_v0, %v295_v10  ;;  %832 = vmatpush3.bf16.msra.mxu1 %v898_v63 }
  0x46   : > { %v314_v11 = vadd.f32 %v312_v7, %v308_v4  ;;  %833 = vmatprep.subr.bf16.mxu1 %v899_v12 }
  0x47   : > { %v307_v14 = vadd.f32 %v305_v3, %v301_v5 }
  0x48   : > { %v320_v21 = vadd.f32 %v318_v9, %v314_v11 }
  0x49   : > { %v313_v19 = vadd.f32 %v311_v17, %v307_v14  ;;  %834 = vmatpush3.bf16.msra.mxu1 %v899_v12 }
  0x4a   : > { %835 = vmatprep.subr.bf16.mxu1 %v900_v38 }
  0x4b   : > { %v319_v22 = vadd.f32 %v317_v20, %v313_v19 }
  0x4d   : > { %836 = vmatpush3.bf16.msra.mxu1 %v900_v38 }
  0xaa   : > { %v882_v23 = vpop.permute.xlu0 %881 }
  0xab   : > { %v884_v25 = vunpack.i.h.bf16 %v882_v23  ;;  %v883_v26 = vunpack.i.l.bf16 %v882_v23 }
  0xad   : > { %v449_v16 = vsel %vm447_vm0, %v320_v21, %v884_v25  ;;  %v448_v29 = vsel %vm447_vm0, %v319_v22, %v883_v26 }
  0xb0   : > { %v887_v24 = vpop.permute.xlu0 %886 }
  0xb1   : > { %v889_v27 = vunpack.i.h.bf16 %v887_v24  ;;  %v888_v28 = vunpack.i.l.bf16 %v887_v24 }
  0xb3   : > { %v451_v18 = vsel %vm450_vm1, %v448_v29, %v888_v28  ;;  %v452_v31 = vsel %vm450_vm1, %v449_v16, %v889_v27 }
  0xb7   : > { %v892_v30 = vpop.permute.xlu1 %891 }
  0xb8   : > { %v894_v32 = vunpack.i.h.bf16 %v892_v30  ;;  %v893_v33 = vunpack.i.l.bf16 %v892_v30 }
  0xba   : > { %v454_v34 = vsel %vm453_vm2, %v451_v18, %v893_v33  ;;  %v455_v35 = vsel %vm453_vm2, %v452_v31, %v894_v32 }
  0xbb   : > { %v456_v36 = vpack.c.bf16 %v455_v35, %v454_v34 }
  0xbd   : > { %823 = vmatprep.subr.bf16.mxu0 %v456_v36 }
  0xbe   : > { %824 = vmatpush3.bf16.msra.mxu0 %v456_v36 }
  0xc1   : > { %826 = vmatmul.mubr.msk.bf16.vlgmr.msra.gmra.mrb[0].mxu0 %vm447_vm0, %v896_v37 }
 0x194   : > { %v827_v39 = vpop.f32.mrb[0].mxu0 }
 0x195   : > { %v511_v40 = vpop.f32.mrb[1].mxu0 }
 0x196   : > { %v828_v41 = vpop.f32.mrb[2].mxu0 }
 0x197   : > { %v527_v42 = vpack.c.bf16 %v828_v41, %v827_v39  ;;  %v514_v43 = vpop.f32.mrb[3].mxu0 }
 0x198   : > { %v526_v44 = vpack.c.bf16 %v514_v43, %v511_v40 }
 0x19a   : > { %837 = vmatprep.mubr.msk.bf16.mxu1 %vm560_vm3, %v526_v44 }
 0x19b   : > { %838 = vmatmul.mubr.msk.bf16.vlgmr.msra.gmra.mrb[0].mxu1 %vm560_vm3, %v527_v42 }
 0x26e   : > { %v839_v45 = vpop.f32.mrb[0].mxu1 }
 0x26f   : > { %618 = vst [vmem:[%s255_s29 + $0x10] sm:$0xff] %v839_v45  ;;  %v601_v46 = vpop.f32.mrb[1].mxu1 }
 0x270   : > { %616 = vst [vmem:[%s255_s29] sm:$0xff] %v601_v46  ;;  %v840_v47 = vpop.f32.mrb[2].mxu1 }
 0x271   : > { %619 = vst [vmem:[%s255_s29 + $0x18] sm:$0xff] %v840_v47  ;;  %v604_v48 = vpop.f32.mrb[3].mxu1 }
 0x272   : > { %617 = vst [vmem:[%s255_s29 + $0x8] sm:$0xff] %v604_v48 }
 0x273 PF: > { %s15_s17 = sadd.s32 1, %s942_s17   ;;  %s1209_s15 = smov %s938_s16 }
 0x274   : > { %p12_p2 = scmp.ge.s32.totalorder %s15_s17, 4   ;;  %s1210_s16 = smov %s1212_s19 }
 0x276   :  { %14 = sbr.rel (!%p12_p2) target bundleno = 2 (0x2), region = 79 }
 0x27d   :  { %650 = vsyncpa [#allocation3], 1 }
 0x27e   :  { %652 = vsyncpa [#allocation3 + $0x1], 1 }

</bundles_post_ra>
